<compile_context>
chip_gen: v5e
topology: v5e:2x2
jax: 0.10.0
libtpu: 0.0.40
codegen_flags: <defaults>
</compile_context>

<pallas_src>
import functools

import jax
import jax.numpy as jnp
from jax.experimental import pallas as pl
from jax.experimental.pallas import tpu as pltpu

LANE = 128
MAX_TILE_POINTS = 262144          # points per grid step (tile_r <= 2048)
_PALLAS_MIN_POINTS = 2048         # below this, plain fused XLA is faster


@functools.lru_cache(maxsize=None)
def _tensorcores_per_device() -> int:
    """2 on v7x (two TensorCores per device), else 1 (v5e / v6e)."""
    try:
        kind = jax.devices()[0].device_kind.lower()
    except Exception:
        return 1
    return 2 if "v7" in kind else 1


def _dist_sum_kernel(dp_ref, pts_ref, o_ref):
    """Streaming per-point distance accumulation.

    dp_ref  : (B*12,) f32 SMEM  -- per-batch [dR row-major (9), dt (3)]
    pts_ref : (1, 3, tile_r, 128) VMEM block of the padded point cloud
    o_ref   : (1, 1, 8, 128) f32 lane-dense partial-sum accumulator
    """
    b = pl.program_id(0)
    j = pl.program_id(2)

    @pl.when(j == 0)
    def _init():
        o_ref[...] = jnp.zeros_like(o_ref)

    x = pts_ref[0, 0]                       # (tile_r, 128) sublane/lane dense
    y = pts_ref[0, 1]
    z = pts_ref[0, 2]

    # 12 delta-transform scalars from SMEM -> broadcast FMAs on the VPU.
    base = b * 12
    d = [dp_ref[base + k] for k in range(12)]
    dx = d[0] * x + d[1] * y + d[2] * z + d[9]
    dy = d[3] * x + d[4] * y + d[5] * z + d[10]
    dz = d[6] * x + d[7] * y + d[8] * z + d[11]
    dist = jnp.sqrt(dx * dx + dy * dy + dz * dz)

    # Fold sublane groups to a single (8, 128) vreg before accumulating: same
    # number of adds per point, but tile_r/8 x less accumulator ld/st and
    # tile_r/8 x smaller HBM writeback.  Final cross-lane reduce is in the
    # wrapper (once per batch).
    tile_r = dist.shape[0]
    partial = jnp.sum(dist.reshape(tile_r // 8, 8, LANE), axis=0)   # (8, 128)
    o_ref[...] += partial[None, None, :, :]


def _ptcld_dist_sums(pts_b3n, dparams_flat, *, max_tile_points=MAX_TILE_POINTS):
    """Per-batch sum of per-point distances over the ZERO-PADDED cloud.

    pts_b3n: (B, 3, N) f32; dparams_flat: (B*12,) f32.
    Returns (sums_including_padding (B,), n_padded).
    """
    B, _, N = pts_b3n.shape

    r_needed = -(-N // LANE)                      # rows of 128 points
    r8 = -(-r_needed // 8) * 8                    # rounded up to full sublanes
    max_tile_r = max_tile_points // LANE
    n_tiles = -(-r8 // max_tile_r)                # minimum number of tiles
    split = _tensorcores_per_device() if n_tiles >= 2 else 1
    n_tiles = -(-n_tiles // split) * split
    per_tile = -(-r8 // n_tiles)
    tile_r = -(-per_tile // 8) * 8                # multiple of 8, <= max_tile_r
    r_pad = tile_r * n_tiles
    nj = n_tiles // split
    n_padded = r_pad * LANE

    if n_padded > N:
        pts = jnp.pad(pts_b3n, ((0, 0), (0, 0), (0, n_padded - N)))
    else:
        pts = pts_b3n
    pts = pts.reshape(B, 3, r_pad, LANE)

    cost = pl.CostEstimate(
        flops=30 * B * n_padded,
        transcendentals=B * n_padded,
        bytes_accessed=12 * B * n_padded + 4 * B * split * 8 * LANE + 4 * B * 12,
    )

    out = pl.pallas_call(
        _dist_sum_kernel,
        out_shape=jax.ShapeDtypeStruct((B, split, 8, LANE), jnp.float32),
        grid_spec=pltpu.PrefetchScalarGridSpec(
            num_scalar_prefetch=1,                 # dparams -> SMEM
            grid=(B, split, nj),
            in_specs=[
                pl.BlockSpec((1, 3, tile_r, LANE),
                             lambda b, s, j, dp: (b, 0, s * nj + j, 0)),
            ],
            out_specs=pl.BlockSpec((1, 1, 8, LANE),
                                   lambda b, s, j, dp: (b, s, 0, 0)),
        ),
        compiler_params=pltpu.CompilerParams(
            dimension_semantics=("parallel", "parallel", "arbitrary")),
        cost_estimate=cost,
    )(dparams_flat, pts)
    return jnp.sum(out, axis=(1, 2, 3)), n_padded          # (B,), int


def quaternion_to_matrix(q):
    """q: (B, 4) real-first (w, x, y, z); matches pytorch3d.quaternion_to_matrix."""
    r, i, j, k = q[:, 0], q[:, 1], q[:, 2], q[:, 3]
    two_s = 2.0 / jnp.sum(q * q, axis=-1)
    o = jnp.stack([
        1 - two_s * (j * j + k * k), two_s * (i * j - k * r), two_s * (i * k + j * r),
        two_s * (i * j + k * r), 1 - two_s * (i * i + k * k), two_s * (j * k - i * r),
        two_s * (i * k - j * r), two_s * (j * k + i * r), 1 - two_s * (i * i + j * j),
    ], axis=-1)
    return o.reshape(q.shape[0], 3, 3)


@jax.jit
def get_loss_forward(predT, srcClrT, srcDepthT, gtPtCldT, targetTransformT):
    """Pallas port of get_loss.forward (calibFileRootDir / device / mode dropped)."""
    del srcClrT, srcDepthT                  # unused by the loss, as in PyTorch
    predT = predT.astype(jnp.float32)
    targetTransformT = targetTransformT.astype(jnp.float32)
    pts_bn3 = gtPtCldT[:, :, :3].astype(jnp.float32)        # (B, N, 3)

    B = predT.shape[0]
    N = pts_bn3.shape[1]
    predRot = quaternion_to_matrix(predT[:, :4])            # (B, 3, 3)
    predTrans = predT[:, 4:]                                # (B, 3)
    gtR = targetTransformT[:, :3, :3]
    gtT = targetTransformT[:, :3, 3]

    # Tiny per-batch losses: plain JAX (~20 flops per batch element).
    eye = jnp.eye(3, dtype=jnp.float32)
    m = jnp.einsum('bij,bik->bjk', predRot, gtR) - eye      # predRot^T @ gtR - I
    rotationLoss = jnp.sqrt(jnp.sum(m * m, axis=(1, 2)))                  # (B,)
    translationLoss = jnp.sqrt(jnp.sum((predTrans - gtT) ** 2, axis=-1))  # (B,)

    # Fused delta transform: gt-transformed minus pred-transformed point is
    # (R_gt - R_pred) @ p + (t_gt - t_pred) since both act on the same points.
    dR = gtR - predRot                                      # (B, 3, 3)
    dt = gtT - predTrans                                    # (B, 3)

    if N < _PALLAS_MIN_POINTS:
        # Tiny clouds: the pallas launch + relayout copies dominate; use XLA.
        diff = jnp.einsum('bni,bji->bnj', pts_bn3, dR) + dt[:, None, :]
        dist_sum = jnp.sum(jnp.sqrt(jnp.sum(diff * diff, axis=-1)), axis=-1)
    else:
        dparams = jnp.concatenate([dR.reshape(B, 9), dt], axis=-1).reshape(-1)
        pts = jnp.transpose(pts_bn3, (0, 2, 1))             # (B, 3, N) lane-dense
        kernel_sum, n_padded = _ptcld_dist_sums(pts, dparams)   # includes padding
        # Zero-padded points sit at the origin, so each contributes exactly
        # ||dt_b|| (== translationLoss_b); subtract that analytically instead
        # of masking every tile in-kernel.
        pad_count = n_padded - N
        dist_sum = kernel_sum - jnp.float32(pad_count) * translationLoss

    mean_dist = jnp.sum(dist_sum) / (B * N)                 # torch.mean over (B, N)
    total = (mean_dist + 1.5 * jnp.mean(translationLoss)
             + 2.0 * jnp.mean(rotationLoss))
    return total.astype(jnp.float32), mean_dist


if __name__ == "__main__":
    key = jax.random.PRNGKey(0)
    kq, kt, kT, kg, kp, kc, kd = jax.random.split(key, 7)

    B, N = 2, 8192          # N large enough to exercise the Pallas path
    H = W = 16

    # predicted pose: quaternion (w, x, y, z) + translation
    pred_quat = jax.random.normal(kq, (B, 4), jnp.float32)
    pred_quat = pred_quat / jnp.linalg.norm(pred_quat, axis=-1, keepdims=True)
    pred_trans = 0.1 * jax.random.normal(kt, (B, 3), jnp.float32)
    predT = jnp.concatenate([pred_quat, pred_trans], axis=-1)       # (B, 7)

    # ground-truth SE3 transform (valid rotation + translation, bottom row 0001)
    gt_quat = jax.random.normal(kT, (B, 4), jnp.float32)
    gt_quat = gt_quat / jnp.linalg.norm(gt_quat, axis=-1, keepdims=True)
    gt_R = quaternion_to_matrix(gt_quat)                            # (B, 3, 3)
    gt_t = 0.1 * jax.random.normal(kg, (B, 3), jnp.float32)
    top = jnp.concatenate([gt_R, gt_t[:, :, None]], axis=-1)        # (B, 3, 4)
    bottom = jnp.tile(jnp.array([[[0., 0., 0., 1.]]], jnp.float32), (B, 1, 1))
    targetTransformT = jnp.concatenate([top, bottom], axis=1)       # (B, 4, 4)

    gtPtCldT = jax.random.normal(kp, (B, N, 3), jnp.float32)        # (B, N, 3)
    srcClrT = jax.random.normal(kc, (B, 3, H, W), jnp.float32)      # NCHW, unused
    srcDepthT = jax.random.normal(kd, (B, 1, H, W), jnp.float32)    # NCHW, unused

    total_loss, mean_dist = get_loss_forward(
        predT, srcClrT, srcDepthT, gtPtCldT, targetTransformT)
    jax.block_until_ready((total_loss, mean_dist))
    print("KERNEL_OK")
</pallas_src>

<mosaic_0001>
module attributes {stable_mosaic.version = 11 : i64} {
  func.func @_dist_sum_kernel(%arg0: i32, %arg1: i32, %arg2: i32, %arg3: memref<24xf32, #tpu.memory_space<smem>>, %arg4: memref<1x3x64x128xf32, #tpu.memory_space<vmem>>, %arg5: memref<1x1x8x128xf32, #tpu.memory_space<vmem>>) attributes {dimension_semantics = [#tpu.dimension_semantics<parallel>, #tpu.dimension_semantics<parallel>, #tpu.dimension_semantics<arbitrary>], iteration_bounds = array<i64: 2, 1, 1>, scalar_prefetch = 1 : i64, scratch_operands = 0 : i64, tpu.core_type = #tpu.core_type<tc>, window_params = [{transform_indices = @transform_0, window_bounds = array<i64: 1, 3, 64, 128>}, {transform_indices = @transform_1, window_bounds = array<i64: 1, 1, 8, 128>}]} {
    %c0_i32 = arith.constant 0 : i32
    %0 = arith.cmpi eq, %arg2, %c0_i32 : i32
    %1 = arith.extui %0 : i1 to i32
    %c0_i32_0 = arith.constant 0 : i32
    %2 = arith.cmpi ne, %1, %c0_i32_0 : i32
    scf.if %2 {
      %cst_19 = arith.constant 0.000000e+00 : f32
      %88 = vector.broadcast %cst_19 : f32 to vector<1x1x8x128xf32>
      %c0_20 = arith.constant 0 : index
      %c0_21 = arith.constant 0 : index
      %c0_22 = arith.constant 0 : index
      %c0_23 = arith.constant 0 : index
      %89 = vector.load %arg5[%c0_20, %c0_21, %c0_22, %c0_23] : memref<1x1x8x128xf32, #tpu.memory_space<vmem>>, vector<1x1x8x128xf32>
      tpu.vector_store %arg5[%c0_20, %c0_21, %c0_22, %c0_23], %88 {strides = array<i32>} : memref<1x1x8x128xf32, #tpu.memory_space<vmem>>, vector<1x1x8x128xf32>,
    } else {
    }
    %c0 = arith.constant 0 : index
    %c0_1 = arith.constant 0 : index
    %c0_2 = arith.constant 0 : index
    %c0_3 = arith.constant 0 : index
    %3 = vector.load %arg4[%c0, %c0_1, %c0_2, %c0_3] : memref<1x3x64x128xf32, #tpu.memory_space<vmem>>, vector<1x1x64x128xf32>
    %4 = vector.shape_cast %3 : vector<1x1x64x128xf32> to vector<64x128xf32>
    %c0_4 = arith.constant 0 : index
    %c1 = arith.constant 1 : index
    %c0_5 = arith.constant 0 : index
    %c0_6 = arith.constant 0 : index
    %5 = vector.load %arg4[%c0_4, %c1, %c0_5, %c0_6] : memref<1x3x64x128xf32, #tpu.memory_space<vmem>>, vector<1x1x64x128xf32>
    %6 = vector.shape_cast %5 : vector<1x1x64x128xf32> to vector<64x128xf32>
    %c0_7 = arith.constant 0 : index
    %c2 = arith.constant 2 : index
    %c0_8 = arith.constant 0 : index
    %c0_9 = arith.constant 0 : index
    %7 = vector.load %arg4[%c0_7, %c2, %c0_8, %c0_9] : memref<1x3x64x128xf32, #tpu.memory_space<vmem>>, vector<1x1x64x128xf32>
    %8 = vector.shape_cast %7 : vector<1x1x64x128xf32> to vector<64x128xf32>
    %c12_i32 = arith.constant 12 : i32
    %9 = arith.muli %arg0, %c12_i32 : i32
    %c0_i32_10 = arith.constant 0 : i32
    %10 = arith.addi %9, %c0_i32_10 : i32
    %11 = arith.index_cast %10 : i32 to index
    %12 = memref.load %arg3[%11] : memref<24xf32, #tpu.memory_space<smem>>
    %c1_i32 = arith.constant 1 : i32
    %13 = arith.addi %9, %c1_i32 : i32
    %14 = arith.index_cast %13 : i32 to index
    %15 = memref.load %arg3[%14] : memref<24xf32, #tpu.memory_space<smem>>
    %c2_i32 = arith.constant 2 : i32
    %16 = arith.addi %9, %c2_i32 : i32
    %17 = arith.index_cast %16 : i32 to index
    %18 = memref.load %arg3[%17] : memref<24xf32, #tpu.memory_space<smem>>
    %c3_i32 = arith.constant 3 : i32
    %19 = arith.addi %9, %c3_i32 : i32
    %20 = arith.index_cast %19 : i32 to index
    %21 = memref.load %arg3[%20] : memref<24xf32, #tpu.memory_space<smem>>
    %c4_i32 = arith.constant 4 : i32
    %22 = arith.addi %9, %c4_i32 : i32
    %23 = arith.index_cast %22 : i32 to index
    %24 = memref.load %arg3[%23] : memref<24xf32, #tpu.memory_space<smem>>
    %c5_i32 = arith.constant 5 : i32
    %25 = arith.addi %9, %c5_i32 : i32
    %26 = arith.index_cast %25 : i32 to index
    %27 = memref.load %arg3[%26] : memref<24xf32, #tpu.memory_space<smem>>
    %c6_i32 = arith.constant 6 : i32
    %28 = arith.addi %9, %c6_i32 : i32
    %29 = arith.index_cast %28 : i32 to index
    %30 = memref.load %arg3[%29] : memref<24xf32, #tpu.memory_space<smem>>
    %c7_i32 = arith.constant 7 : i32
    %31 = arith.addi %9, %c7_i32 : i32
    %32 = arith.index_cast %31 : i32 to index
    %33 = memref.load %arg3[%32] : memref<24xf32, #tpu.memory_space<smem>>
    %c8_i32 = arith.constant 8 : i32
    %34 = arith.addi %9, %c8_i32 : i32
    %35 = arith.index_cast %34 : i32 to index
    %36 = memref.load %arg3[%35] : memref<24xf32, #tpu.memory_space<smem>>
    %c9_i32 = arith.constant 9 : i32
    %37 = arith.addi %9, %c9_i32 : i32
    %38 = arith.index_cast %37 : i32 to index
    %39 = memref.load %arg3[%38] : memref<24xf32, #tpu.memory_space<smem>>
    %c10_i32 = arith.constant 10 : i32
    %40 = arith.addi %9, %c10_i32 : i32
    %41 = arith.index_cast %40 : i32 to index
    %42 = memref.load %arg3[%41] : memref<24xf32, #tpu.memory_space<smem>>
    %c11_i32 = arith.constant 11 : i32
    %43 = arith.addi %9, %c11_i32 : i32
    %44 = arith.index_cast %43 : i32 to index
    %45 = memref.load %arg3[%44] : memref<24xf32, #tpu.memory_space<smem>>
    %46 = vector.broadcast %12 : f32 to vector<64x128xf32>
    %47 = arith.mulf %46, %4 : vector<64x128xf32>
    %48 = vector.broadcast %15 : f32 to vector<64x128xf32>
    %49 = arith.mulf %48, %6 : vector<64x128xf32>
    %50 = arith.addf %47, %49 : vector<64x128xf32>
    %51 = vector.broadcast %18 : f32 to vector<64x128xf32>
    %52 = arith.mulf %51, %8 : vector<64x128xf32>
    %53 = arith.addf %50, %52 : vector<64x128xf32>
    %54 = vector.broadcast %39 : f32 to vector<64x128xf32>
    %55 = arith.addf %53, %54 : vector<64x128xf32>
    %56 = vector.broadcast %21 : f32 to vector<64x128xf32>
    %57 = arith.mulf %56, %4 : vector<64x128xf32>
    %58 = vector.broadcast %24 : f32 to vector<64x128xf32>
    %59 = arith.mulf %58, %6 : vector<64x128xf32>
    %60 = arith.addf %57, %59 : vector<64x128xf32>
    %61 = vector.broadcast %27 : f32 to vector<64x128xf32>
    %62 = arith.mulf %61, %8 : vector<64x128xf32>
    %63 = arith.addf %60, %62 : vector<64x128xf32>
    %64 = vector.broadcast %42 : f32 to vector<64x128xf32>
    %65 = arith.addf %63, %64 : vector<64x128xf32>
    %66 = vector.broadcast %30 : f32 to vector<64x128xf32>
    %67 = arith.mulf %66, %4 : vector<64x128xf32>
    %68 = vector.broadcast %33 : f32 to vector<64x128xf32>
    %69 = arith.mulf %68, %6 : vector<64x128xf32>
    %70 = arith.addf %67, %69 : vector<64x128xf32>
    %71 = vector.broadcast %36 : f32 to vector<64x128xf32>
    %72 = arith.mulf %71, %8 : vector<64x128xf32>
    %73 = arith.addf %70, %72 : vector<64x128xf32>
    %74 = vector.broadcast %45 : f32 to vector<64x128xf32>
    %75 = arith.addf %73, %74 : vector<64x128xf32>
    %76 = arith.mulf %55, %55 : vector<64x128xf32>
    %77 = arith.mulf %65, %65 : vector<64x128xf32>
    %78 = arith.addf %76, %77 : vector<64x128xf32>
    %79 = arith.mulf %75, %75 : vector<64x128xf32>
    %80 = arith.addf %78, %79 : vector<64x128xf32>
    %81 = math.sqrt %80 : vector<64x128xf32>
    %82 = vector.shape_cast %81 : vector<64x128xf32> to vector<8x8x128xf32>
    %cst = arith.constant dense<0.000000e+00> : vector<8x128xf32>
    %83 = vector.multi_reduction <add>, %82, %cst [0] : vector<8x8x128xf32> to vector<8x128xf32>
    %c0_11 = arith.constant 0 : index
    %c0_12 = arith.constant 0 : index
    %c0_13 = arith.constant 0 : index
    %c0_14 = arith.constant 0 : index
    %84 = vector.load %arg5[%c0_11, %c0_12, %c0_13, %c0_14] : memref<1x1x8x128xf32, #tpu.memory_space<vmem>>, vector<1x1x8x128xf32>
    %85 = vector.shape_cast %83 : vector<8x128xf32> to vector<1x1x8x128xf32>
    %86 = arith.addf %84, %85 : vector<1x1x8x128xf32>
    %c0_15 = arith.constant 0 : index
    %c0_16 = arith.constant 0 : index
    %c0_17 = arith.constant 0 : index
    %c0_18 = arith.constant 0 : index
    %87 = vector.load %arg5[%c0_15, %c0_16, %c0_17, %c0_18] : memref<1x1x8x128xf32, #tpu.memory_space<vmem>>, vector<1x1x8x128xf32>
    tpu.vector_store %arg5[%c0_15, %c0_16, %c0_17, %c0_18], %86 {strides = array<i32>} : memref<1x1x8x128xf32, #tpu.memory_space<vmem>>, vector<1x1x8x128xf32>,
    return
  }
  func.func @transform_0(%arg0: i32, %arg1: i32, %arg2: i32, %arg3: memref<24xf32, #tpu.memory_space<smem>>) -> (i32, i32, i32, i32) {
    %c1_i32 = arith.constant 1 : i32
    %0 = arith.muli %arg1, %c1_i32 : i32
    %1 = arith.addi %0, %arg2 : i32
    %c0_i32 = arith.constant 0 : i32
    %c0_i32_0 = arith.constant 0 : i32
    %c0_i32_1 = arith.constant 0 : i32
    return %arg0, %c0_i32, %1, %c0_i32_0 : i32, i32, i32, i32
  }
  func.func @transform_1(%arg0: i32, %arg1: i32, %arg2: i32, %arg3: memref<24xf32, #tpu.memory_space<smem>>) -> (i32, i32, i32, i32) {
    %c0_i32 = arith.constant 0 : i32
    %c0_i32_0 = arith.constant 0 : i32
    %c0_i32_1 = arith.constant 0 : i32
    return %arg0, %arg1, %c0_i32, %c0_i32_0 : i32, i32, i32, i32
  }
}

</mosaic_0001>

<bundles_post_ra>
// kernel: get_loss_forward.1
= control target key start
LH: loop header
LB: loop body
LE: loop exit
PB: predicated region body
PF: predicated region fallthrough
CT: control target
= control target key end

     0   :  { %s717_s12 = smov [#allocation3]   ;;  %s1114_s0 = inlined_call_operand.vmem [shape: f32[24], index: 0, kind: input, shape index: {}]   ;;  %s1115_s1 = inlined_call_operand.vmem [shape: f32[2,3,64,128], index: 1, kind: input, shape index: {}]   ;;  %s1116_s2 = inlined_call_operand.vmem [shape: f32[2,1,8,128], index: 2, kind: output, shape index: {}]  }
   0x1   :  { %s8_s11 = sshll.u32 %s1114_s0, 4  ;;  %s9_s11 = int_to_ptr.vmem [resolvable:$true] %s8_s11 }
   0x2   :  { %11 = dma.vmem_to_smem %s9_s11, 16, %s717_s12, [#allocation2] }
   0x3   :  { %703 = dma.done.wait [#allocation2], 16 }
   0x4   :  { %704 = vsyncadd [#allocation2], 4294967280 }
   0x5   :  { %14 = sfence }
   0x6   :  { %s736_s13 = smov 0   ;;  %s738_s14 = smov 0  }
   0x7   :  { %s740_s15 = smov 0  }
   0x8 LB: > { %s39_s0 = sadd.s32 1, %s711_s14  ;;  %p615_p0 = scmp.ge.s32.totalorder %s715_s15, 1  ;;  %s715_s15 = sphi %s740_s15, %s20_s15   ;;  %s711_s14 = sphi %s738_s14, %s1118_s14   ;;  %s707_s13 = sphi %s736_s13, %s1117_s13  }
   0x9   : > { %p41_p1 = scmp.ge.s32.totalorder %s39_s0, 2  ;;  %p128_p2 = scmp.lt.s32.totalorder %s715_s15, 3 }
   0xb   : > { %s1120_s0 = smov (%p41_p1, %s39_s0), 0  ;;  %p129_p3 = pnand %p615_p0, %p128_p2 }
   0xc   : > { %p157_p4 = scmp.lt.s32.totalorder (!%p129_p3), %s707_s13, 1  ;;  %s754_s16 = smul.u32 (!%p129_p3), 12, %s707_s13 }
   0xd   : > { %132 = sbr.rel (%p129_p3) target bundleno = 109 (0x6d), region = 24 }
   0xe   : > { %s206_s17 = sld [smem:[#allocation3 + %s754_s16]] (!%p129_p3)  ;;  %s207_s18 = sadd.s32 (!%p129_p3), 1, %s754_s16 }
   0xf   : > { %s761_s20 = sld [smem:[#allocation3 + %s207_s18]] (!%p129_p3)  ;;  %s209_s24 = sadd.s32 (!%p129_p3), 2, %s754_s16 }
  0x10   : > { %s211_s25 = sadd.s32 (!%p129_p3), 3, %s754_s16  ;;  %s788_s26 = sld [smem:[#allocation3 + %s209_s24]] (!%p129_p3) }
  0x11   : > { %s799_s27 = sld [smem:[#allocation3 + %s211_s25]] (!%p129_p3)  ;;  %s213_s28 = sadd.s32 (!%p129_p3), 4, %s754_s16 }
  0x12   : > { %s1122_s13 = smov (!%p157_p4, %s707_s13), 1  ;;  %s215_s29 = sadd.s32 5, %s754_s16 }
  0x13   : > { %s636_s19 = smul.u32 192, %s1122_s13  ;;  %s829_s30 = sld [smem:[#allocation3 + %s213_s28]] }
  0x14   : > { %v229_v9 = vstv %s206_s17  ;;  %s835_s3 = sld [smem:[#allocation3 + %s215_s29]]  ;;  %s223_s4 = sadd.s32 9, %s754_s16 }
  0x15   : > { %s766_s23 = scalar_lea.vmem %s1115_s1, %s636_s19  ;;  %v238_v25 = vstv %s761_s20  ;;  %s848_s5 = sld [smem:[#allocation3 + %s223_s4]] }
  0x16   : > { %v770_v0 = vld [vmem:[%s766_s23] sm:$0xff]  ;;  %v773_v1 = vld [vmem:[%s766_s23 + $0x8] sm:$0xff]  ;;  %v776_v2 = vld [vmem:[%s766_s23 + $0x10] sm:$0xff]  ;;  %v255_v50 = vstv %s788_s26  ;;  %s217_s6 = sadd.s32 6, %s754_s16  ;;  %s225_s7 = sadd.s32 10, %s754_s16 }
  0x17   : > { %v780_v3 = vld [vmem:[%s766_s23 + $0x18] sm:$0xff]  ;;  %v783_v4 = vld [vmem:[%s766_s23 + $0x20] sm:$0xff]  ;;  %v786_v5 = vld [vmem:[%s766_s23 + $0x28] sm:$0xff]  ;;  %v230_v13 = vmul.f32 %v229_v9, %v770_v0  ;;  %v231_v17 = vmul.f32 %v229_v9, %v773_v1  ;;  %v232_v18 = vmul.f32 %v229_v9, %v776_v2  ;;  %v281_v51 = vstv %s799_s27  ;;  %s219_s8 = sadd.s32 7, %s754_s16  ;;  %s903_s9 = sld [smem:[#allocation3 + %s217_s6]] }
  0x18   : > { %v791_v6 = vld [vmem:[%s766_s23 + $0x30] sm:$0xff]  ;;  %v794_v7 = vld [vmem:[%s766_s23 + $0x38] sm:$0xff]  ;;  %v797_v8 = vld [vmem:[%s766_s23 + $0x40] sm:$0xff]  ;;  %v233_v19 = vmul.f32 %v229_v9, %v780_v3  ;;  %v234_v20 = vmul.f32 %v229_v9, %v783_v4  ;;  %v235_v22 = vmul.f32 %v229_v9, %v786_v5  ;;  %s909_s10 = sld [smem:[#allocation3 + %s225_s7]]  ;;  %s221_s12 = sadd.s32 8, %s754_s16 }
  0x19   : > { %v803_v10 = vld [vmem:[%s766_s23 + $0x48] sm:$0xff]  ;;  %v806_v11 = vld [vmem:[%s766_s23 + $0x50] sm:$0xff]  ;;  %v809_v12 = vld [vmem:[%s766_s23 + $0x58] sm:$0xff]  ;;  %v236_v23 = vmul.f32 %v229_v9, %v791_v6  ;;  %v237_v24 = vmul.f32 %v229_v9, %v794_v7  ;;  %v239_v26 = vmul.f32 %v797_v8, %v238_v25  ;;  %s915_s11 = sld [smem:[#allocation3 + %s219_s8]]  ;;  %s227_s17 = sadd.s32 11, %s754_s16 }
  0x1a   : > { %v814_v14 = vld [vmem:[%s766_s23 + $0x60] sm:$0xff]  ;;  %v817_v15 = vld [vmem:[%s766_s23 + $0x68] sm:$0xff]  ;;  %v820_v16 = vld [vmem:[%s766_s23 + $0x70] sm:$0xff]  ;;  %v240_v27 = vmul.f32 %v803_v10, %v238_v25  ;;  %v241_v28 = vmul.f32 %v806_v11, %v238_v25  ;;  %v242_v29 = vmul.f32 %v809_v12, %v238_v25  ;;  %s934_s18 = sld [smem:[#allocation3 + %s221_s12]]  ;;  %s617_s16 = sshll.u32 %s1122_s13, 3 }
  0x1b   : > { %v827_v21 = vld [vmem:[%s766_s23 + $0x78] sm:$0xff]  ;;  %v843_v30 = vld [vmem:[%s766_s23 + $0x80] sm:$0xff]  ;;  %v846_v31 = vld [vmem:[%s766_s23 + $0x88] sm:$0xff]  ;;  %v243_v32 = vmul.f32 %v814_v14, %v238_v25  ;;  %v244_v33 = vmul.f32 %v817_v15, %v238_v25  ;;  %v245_v34 = vmul.f32 %v820_v16, %v238_v25  ;;  %v247_v39 = vadd.f32 %v239_v26, %v230_v13  ;;  %s940_s19 = sld [smem:[#allocation3 + %s227_s17]]  ;;  %s173_s22 = scalar_lea.vmem %s1116_s2, %s617_s16 }
  0x1c   : > { %v246_v35 = vmul.f32 %v827_v21, %v238_v25  ;;  %v855_v36 = vld [vmem:[%s766_s23 + $0x90] sm:$0xff]  ;;  %v858_v37 = vld [vmem:[%s766_s23 + $0x98] sm:$0xff]  ;;  %v861_v38 = vld [vmem:[%s766_s23 + $0xa0] sm:$0xff]  ;;  %v248_v40 = vadd.f32 %v240_v27, %v231_v17  ;;  %v249_v44 = vadd.f32 %v241_v28, %v232_v18  ;;  %v250_v45 = vadd.f32 %v242_v29, %v233_v19 }
  0x1d   : > { %v864_v41 = vld [vmem:[%s766_s23 + $0xa8] sm:$0xff]  ;;  %v867_v42 = vld [vmem:[%s766_s23 + $0xb0] sm:$0xff]  ;;  %v870_v43 = vld [vmem:[%s766_s23 + $0xb8] sm:$0xff]  ;;  %v251_v46 = vadd.f32 %v243_v32, %v234_v20  ;;  %v252_v47 = vadd.f32 %v244_v33, %v235_v22  ;;  %v253_v48 = vadd.f32 %v245_v34, %v236_v23  ;;  %v256_v52 = vmul.f32 %v843_v30, %v255_v50 }
  0x1e   : > { %v254_v49 = vadd.f32 %v246_v35, %v237_v24  ;;  %v257_v53 = vmul.f32 %v846_v31, %v255_v50  ;;  %v258_v54 = vmul.f32 %v855_v36, %v255_v50  ;;  %v259_v55 = vmul.f32 %v858_v37, %v255_v50 }
  0x1f   : > { %v260_v56 = vmul.f32 %v861_v38, %v255_v50  ;;  %v261_v57 = vmul.f32 %v864_v41, %v255_v50  ;;  %v262_v58 = vmul.f32 %v867_v42, %v255_v50  ;;  %v263_v59 = vmul.f32 %v870_v43, %v255_v50 }
  0x20   : > { %v264_v60 = vadd.f32 %v256_v52, %v247_v39  ;;  %v265_v61 = vadd.f32 %v257_v53, %v248_v40  ;;  %v266_v62 = vadd.f32 %v258_v54, %v249_v44  ;;  %v267_v63 = vadd.f32 %v259_v55, %v250_v45 }
  0x21   : > { %v268_v9 = vadd.f32 %v260_v56, %v251_v46  ;;  %v269_v13 = vadd.f32 %v261_v57, %v252_v47  ;;  %v290_v17 = vstv %s829_s30  ;;  %v307_v18 = vstv %s835_s3 }
  0x22   : > { %v270_v19 = vadd.f32 %v262_v58, %v253_v48  ;;  %v271_v20 = vadd.f32 %v263_v59, %v254_v49  ;;  %v272_v22 = vstv %s848_s5  ;;  %v282_v23 = vmul.f32 %v281_v51, %v770_v0 }
  0x23   : > { %v888_v24 = vadd.f32 %v272_v22, %v264_v60  ;;  %v890_v25 = vadd.f32 %v272_v22, %v265_v61  ;;  %v283_v26 = vmul.f32 %v281_v51, %v773_v1  ;;  %v284_v27 = vmul.f32 %v281_v51, %v776_v2 }
  0x24   : > { %v895_v28 = vadd.f32 %v272_v22, %v266_v62  ;;  %v897_v29 = vadd.f32 %v272_v22, %v267_v63  ;;  %v899_v32 = vadd.f32 %v272_v22, %v268_v9  ;;  %v901_v33 = vadd.f32 %v272_v22, %v269_v13 }
  0x25   : > { %v285_v34 = vmul.f32 %v281_v51, %v780_v3  ;;  %v286_v35 = vmul.f32 %v281_v51, %v783_v4  ;;  %v287_v39 = vmul.f32 %v281_v51, %v786_v5  ;;  %v288_v40 = vmul.f32 %v281_v51, %v791_v6 }
  0x26   : > { %v289_v44 = vmul.f32 %v281_v51, %v794_v7  ;;  %v291_v45 = vmul.f32 %v797_v8, %v290_v17  ;;  %v292_v46 = vmul.f32 %v803_v10, %v290_v17  ;;  %v293_v47 = vmul.f32 %v806_v11, %v290_v17 }
  0x27   : > { %v294_v48 = vmul.f32 %v809_v12, %v290_v17  ;;  %v295_v49 = vmul.f32 %v814_v14, %v290_v17  ;;  %v296_v50 = vmul.f32 %v817_v15, %v290_v17  ;;  %v297_v52 = vmul.f32 %v820_v16, %v290_v17 }
  0x28   : > { %v298_v53 = vmul.f32 %v827_v21, %v290_v17  ;;  %v299_v51 = vadd.f32 %v291_v45, %v282_v23  ;;  %v300_v54 = vadd.f32 %v292_v46, %v283_v26  ;;  %v301_v55 = vadd.f32 %v293_v47, %v284_v27 }
  0x29   : > { %v302_v56 = vadd.f32 %v294_v48, %v285_v34  ;;  %v303_v57 = vadd.f32 %v295_v49, %v286_v35  ;;  %v304_v58 = vadd.f32 %v296_v50, %v287_v39  ;;  %v305_v59 = vadd.f32 %v297_v52, %v288_v40 }
  0x2a   : > { %v306_v60 = vadd.f32 %v298_v53, %v289_v44  ;;  %v308_v61 = vmul.f32 %v843_v30, %v307_v18  ;;  %v309_v62 = vmul.f32 %v846_v31, %v307_v18  ;;  %v310_v63 = vmul.f32 %v855_v36, %v307_v18 }
  0x2b   : > { %v311_v9 = vmul.f32 %v858_v37, %v307_v18  ;;  %v312_v13 = vmul.f32 %v861_v38, %v307_v18  ;;  %v313_v17 = vmul.f32 %v864_v41, %v307_v18  ;;  %v314_v23 = vmul.f32 %v867_v42, %v307_v18 }
  0x2c   : > { %v315_v26 = vmul.f32 %v870_v43, %v307_v18  ;;  %v316_v27 = vadd.f32 %v308_v61, %v299_v51  ;;  %v317_v34 = vadd.f32 %v309_v62, %v300_v54  ;;  %v318_v35 = vadd.f32 %v310_v63, %v301_v55 }
  0x2d   : > { %v932_v39 = vadd.f32 %v272_v22, %v270_v19  ;;  %v319_v40 = vadd.f32 %v311_v9, %v302_v56  ;;  %v320_v44 = vadd.f32 %v312_v13, %v303_v57  ;;  %v321_v45 = vadd.f32 %v313_v17, %v304_v58 }
  0x2e   : > { %v936_v46 = vadd.f32 %v272_v22, %v271_v20  ;;  %v322_v47 = vadd.f32 %v314_v23, %v305_v59  ;;  %v324_v48 = vstv %s909_s10  ;;  %v333_v49 = vstv %s903_s9 }
  0x2f   : > { %v323_v50 = vadd.f32 %v315_v26, %v306_v60  ;;  %v942_v18 = vadd.f32 %v324_v48, %v316_v27  ;;  %v944_v52 = vadd.f32 %v324_v48, %v317_v34  ;;  %v342_v53 = vstv %s915_s11 }
  0x30   : > { %v947_v19 = vadd.f32 %v324_v48, %v318_v35  ;;  %v949_v51 = vadd.f32 %v324_v48, %v319_v40  ;;  %v951_v54 = vadd.f32 %v324_v48, %v320_v44  ;;  %v953_v55 = vadd.f32 %v324_v48, %v321_v45 }
  0x31   : > { %v334_v20 = vmul.f32 %v333_v49, %v770_v0  ;;  %v335_v22 = vmul.f32 %v333_v49, %v773_v1  ;;  %v336_v56 = vmul.f32 %v333_v49, %v776_v2  ;;  %v337_v57 = vmul.f32 %v333_v49, %v780_v3 }
  0x32   : > { %v338_v58 = vmul.f32 %v333_v49, %v783_v4  ;;  %v339_v59 = vmul.f32 %v333_v49, %v786_v5  ;;  %v340_v60 = vmul.f32 %v333_v49, %v791_v6  ;;  %v341_v61 = vmul.f32 %v333_v49, %v794_v7 }
  0x33   : > { %v343_v62 = vmul.f32 %v797_v8, %v342_v53  ;;  %v344_v63 = vmul.f32 %v803_v10, %v342_v53  ;;  %v345_v0 = vmul.f32 %v806_v11, %v342_v53  ;;  %v346_v1 = vmul.f32 %v809_v12, %v342_v53 }
  0x34   : > { %v347_v2 = vmul.f32 %v814_v14, %v342_v53  ;;  %v348_v3 = vmul.f32 %v817_v15, %v342_v53  ;;  %v349_v4 = vmul.f32 %v820_v16, %v342_v53  ;;  %v350_v5 = vmul.f32 %v827_v21, %v342_v53 }
  0x35   : > { %v331_v6 = vadd.f32 %v324_v48, %v322_v47  ;;  %v332_v7 = vadd.f32 %v324_v48, %v323_v50  ;;  %v351_v9 = vadd.f32 %v343_v62, %v334_v20  ;;  %v352_v8 = vadd.f32 %v344_v63, %v335_v22 }
  0x36   : > { %v353_v13 = vadd.f32 %v345_v0, %v336_v56  ;;  %v354_v10 = vadd.f32 %v346_v1, %v337_v57  ;;  %v355_v17 = vadd.f32 %v347_v2, %v338_v58  ;;  %v356_v11 = vadd.f32 %v348_v3, %v339_v59 }
  0x37   : > { %v357_v23 = vadd.f32 %v349_v4, %v340_v60  ;;  %v358_v26 = vadd.f32 %v350_v5, %v341_v61  ;;  %v359_v12 = vstv %s934_s18  ;;  %v376_v27 = vstv %s940_s19 }
  0x38   : > { %v360_v14 = vmul.f32 %v843_v30, %v359_v12  ;;  %v361_v15 = vmul.f32 %v846_v31, %v359_v12  ;;  %v362_v16 = vmul.f32 %v855_v36, %v359_v12  ;;  %v363_v21 = vmul.f32 %v858_v37, %v359_v12 }
  0x39   : > { %v364_v34 = vmul.f32 %v861_v38, %v359_v12  ;;  %v365_v35 = vmul.f32 %v864_v41, %v359_v12  ;;  %v366_v40 = vmul.f32 %v867_v42, %v359_v12  ;;  %v367_v44 = vmul.f32 %v870_v43, %v359_v12 }
  0x3a   : > { %v368_v45 = vadd.f32 %v360_v14, %v351_v9  ;;  %v369_v47 = vadd.f32 %v361_v15, %v352_v8  ;;  %v370_v48 = vadd.f32 %v362_v16, %v353_v13  ;;  %v371_v49 = vadd.f32 %v363_v21, %v354_v10 }
  0x3b   : > { %v372_v50 = vadd.f32 %v364_v34, %v355_v17  ;;  %v373_v30 = vadd.f32 %v365_v35, %v356_v11  ;;  %v374_v53 = vadd.f32 %v366_v40, %v357_v23  ;;  %v375_v31 = vadd.f32 %v367_v44, %v358_v26 }
  0x3c   : > { %v377_v20 = vadd.f32 %v376_v27, %v368_v45  ;;  %v378_v36 = vadd.f32 %v376_v27, %v369_v47  ;;  %v385_v37 = vmul.f32 %v888_v24, %v888_v24  ;;  %v386_v38 = vmul.f32 %v890_v25, %v890_v25 }
  0x3d   : > { %v379_v41 = vadd.f32 %v376_v27, %v370_v48  ;;  %v380_v42 = vadd.f32 %v376_v27, %v371_v49  ;;  %v381_v22 = vadd.f32 %v376_v27, %v372_v50  ;;  %v382_v43 = vadd.f32 %v376_v27, %v373_v30 }
  0x3e   : > { %v383_v56 = vadd.f32 %v376_v27, %v374_v53  ;;  %v384_v57 = vadd.f32 %v376_v27, %v375_v31  ;;  %v387_v58 = vmul.f32 %v895_v28, %v895_v28  ;;  %v388_v59 = vmul.f32 %v897_v29, %v897_v29 }
  0x3f   : > { %v389_v60 = vmul.f32 %v899_v32, %v899_v32  ;;  %v390_v24 = vmul.f32 %v901_v33, %v901_v33  ;;  %v393_v25 = vmul.f32 %v942_v18, %v942_v18  ;;  %v394_v61 = vmul.f32 %v944_v52, %v944_v52 }
  0x40   : > { %v395_v62 = vmul.f32 %v947_v19, %v947_v19  ;;  %v396_v28 = vmul.f32 %v949_v51, %v949_v51  ;;  %v397_v29 = vmul.f32 %v951_v54, %v951_v54  ;;  %v398_v32 = vmul.f32 %v953_v55, %v953_v55 }
  0x41   : > { %v391_v33 = vmul.f32 %v932_v39, %v932_v39  ;;  %v399_v63 = vmul.f32 %v331_v6, %v331_v6  ;;  %v401_v18 = vadd.f32 %v393_v25, %v385_v37  ;;  %v402_v0 = vadd.f32 %v394_v61, %v386_v38 }
  0x42   : > { %v392_v52 = vmul.f32 %v936_v46, %v936_v46  ;;  %v400_v1 = vmul.f32 %v332_v7, %v332_v7  ;;  %v403_v19 = vadd.f32 %v395_v62, %v387_v58  ;;  %v404_v2 = vadd.f32 %v396_v28, %v388_v59 }
  0x43   : > { %v405_v3 = vadd.f32 %v397_v29, %v389_v60  ;;  %v406_v51 = vadd.f32 %v398_v32, %v390_v24  ;;  %v409_v4 = vmul.f32 %v377_v20, %v377_v20  ;;  %v410_v5 = vmul.f32 %v378_v36, %v378_v36 }
  0x44   : > { %v411_v54 = vmul.f32 %v379_v41, %v379_v41  ;;  %v412_v9 = vmul.f32 %v380_v42, %v380_v42  ;;  %v413_v8 = vmul.f32 %v381_v22, %v381_v22  ;;  %v414_v55 = vmul.f32 %v382_v43, %v382_v43 }
  0x45   : > { %v407_v13 = vadd.f32 %v399_v63, %v391_v33  ;;  %v415_v10 = vmul.f32 %v383_v56, %v383_v56  ;;  %v1009_v39 = vadd.f32 %v409_v4, %v401_v18  ;;  %v1011_v6 = vadd.f32 %v410_v5, %v402_v0 }
  0x46   : > { %v408_v17 = vadd.f32 %v400_v1, %v392_v52  ;;  %v416_v11 = vmul.f32 %v384_v57, %v384_v57  ;;  %v1013_v46 = vadd.f32 %v411_v54, %v403_v19  ;;  %v1015_v7 = vadd.f32 %v412_v9, %v404_v2 }
  0x47   : > { %v1017_v23 = vadd.f32 %v413_v8, %v405_v3  ;;  %663 = vrsqrt.f32 %v1009_v39  ;;  %v1020_v26 = vadd.f32 %v414_v55, %v406_v51  ;;  %v1023_v12 = vadd.f32 %v415_v10, %v407_v13 }
  0x48   : > { %665 = vrsqrt.f32 %v1011_v6  ;;  %v1026_v27 = vadd.f32 %v416_v11, %v408_v17  ;;  %vm432_vm0 = vcmp.eq.f32.partialorder %v1009_v39, inf  ;;  %v435_v34 = vand.u32 2147483648, %v1009_v39 }
  0x49   : > { %667 = vrsqrt.f32 %v1013_v46  ;;  %vm434_vm1 = vcmp.eq.f32.partialorder %v1009_v39, 0.0  ;;  %vm444_vm2 = vcmp.eq.f32.partialorder %v1011_v6, inf  ;;  %v447_v45 = vand.u32 2147483648, %v1011_v6 }
  0x4a   : > { %669 = vrsqrt.f32 %v1015_v7  ;;  %vm446_vm3 = vcmp.eq.f32.partialorder %v1011_v6, 0.0  ;;  %vm456_vm4 = vcmp.eq.f32.partialorder %v1013_v46, inf  ;;  %v459_v50 = vand.u32 2147483648, %v1013_v46 }
  0x4b   : > { %671 = vrsqrt.f32 %v1017_v23  ;;  %vm458_vm5 = vcmp.eq.f32.partialorder %v1013_v46, 0.0  ;;  %vm468_vm6 = vcmp.eq.f32.partialorder %v1015_v7, inf  ;;  %v471_v36 = vand.u32 2147483648, %v1015_v7 }
  0x4c   : > { %673 = vrsqrt.f32 %v1020_v26  ;;  %vm480_vm7 = vcmp.eq.f32.partialorder %v1017_v23, inf  ;;  %v483_v22 = vand.u32 2147483648, %v1017_v23  ;;  %vm470_vm8 = vcmp.eq.f32.partialorder %v1015_v7, 0.0 }
  0x4d   : > { %v664_v14 = vpop.eup %663  ;;  %675 = vrsqrt.f32 %v1023_v12  ;;  %vm492_vm9 = vcmp.eq.f32.partialorder %v1020_v26, inf  ;;  %vm482_vm10 = vcmp.eq.f32.partialorder %v1017_v23, 0.0  ;;  %vm504_vm11 = vcmp.eq.f32.partialorder %v1023_v12, inf }
  0x4e   : > { %v666_v15 = vpop.eup %665  ;;  %v426_v16 = vmul.f32 %v664_v14, %v1009_v39  ;;  %677 = vrsqrt.f32 %v1026_v27  ;;  %vm494_vm12 = vcmp.eq.f32.partialorder %v1020_v26, 0.0  ;;  %vm516_vm13 = vcmp.eq.f32.partialorder %v1026_v27, inf }
  0x4f   : > { %v668_v21 = vpop.eup %667  ;;  %v438_v35 = vmul.f32 %v666_v15, %v1011_v6  ;;  %vm506_vm14 = vcmp.eq.f32.partialorder %v1023_v12, 0.0  ;;  %vm518_vm15 = vcmp.eq.f32.partialorder %v1026_v27, 0.0 }
  0x50   : > { %v670_v40 = vpop.eup %669  ;;  %v427_v44 = vmul.f32 %v664_v14, %v426_v16  ;;  %v450_v47 = vmul.f32 %v668_v21, %v1013_v46 }
  0x51   : > { %v672_v48 = vpop.eup %671  ;;  %v439_v49 = vmul.f32 %v666_v15, %v438_v35  ;;  %v462_v30 = vmul.f32 %v670_v40, %v1015_v7 }
  0x52   : > { %v674_v53 = vpop.eup %673  ;;  %v428_v31 = vmul.f32 0.5, %v427_v44  ;;  %v451_v20 = vmul.f32 %v668_v21, %v450_v47  ;;  %v474_v37 = vmul.f32 %v672_v48, %v1017_v23 }
  0x53   : > { %v676_v38 = vpop.eup %675  ;;  %v440_v41 = vmul.f32 0.5, %v439_v49  ;;  %v463_v42 = vmul.f32 %v670_v40, %v462_v30  ;;  %v486_v43 = vmul.f32 %v674_v53, %v1020_v26 }
  0x54   : > { %v678_v56 = vpop.eup %677  ;;  %v429_v57 = vsub.f32 1.5, %v428_v31  ;;  %v452_v58 = vmul.f32 0.5, %v451_v20  ;;  %v475_v59 = vmul.f32 %v672_v48, %v474_v37  ;;  %v498_v60 = vmul.f32 %v676_v38, %v1023_v12 }
  0x55   : > { %v441_v24 = vsub.f32 1.5, %v440_v41  ;;  %v464_v25 = vmul.f32 0.5, %v463_v42  ;;  %v487_v61 = vmul.f32 %v674_v53, %v486_v43  ;;  %v510_v62 = vmul.f32 %v678_v56, %v1026_v27 }
  0x56   : > { %v430_v28 = vmul.f32 %v664_v14, %v429_v57  ;;  %v453_v29 = vsub.f32 1.5, %v452_v58  ;;  %v476_v32 = vmul.f32 0.5, %v475_v59  ;;  %v499_v33 = vmul.f32 %v676_v38, %v498_v60 }
  0x57   : > { %v442_v63 = vmul.f32 %v666_v15, %v441_v24  ;;  %v465_v18 = vsub.f32 1.5, %v464_v25  ;;  %v488_v0 = vmul.f32 0.5, %v487_v61  ;;  %v511_v52 = vmul.f32 %v678_v56, %v510_v62 }
  0x58   : > { %v431_v1 = vmul.f32 %v430_v28, %v1009_v39  ;;  %v454_v19 = vmul.f32 %v668_v21, %v453_v29  ;;  %v477_v2 = vsub.f32 1.5, %v476_v32  ;;  %v500_v3 = vmul.f32 0.5, %v499_v33 }
  0x59   : > { %v443_v51 = vmul.f32 %v442_v63, %v1011_v6  ;;  %v466_v4 = vmul.f32 %v670_v40, %v465_v18  ;;  %v489_v5 = vsub.f32 1.5, %v488_v0  ;;  %v512_v54 = vmul.f32 0.5, %v511_v52 }
  0x5a   : > { %v433_v9 = vsel %vm432_vm0, %v1009_v39, %v431_v1  ;;  %v455_v8 = vmul.f32 %v454_v19, %v1013_v46  ;;  %v478_v55 = vmul.f32 %v672_v48, %v477_v2  ;;  %v501_v13 = vsub.f32 1.5, %v500_v3 }
  0x5b   : > { %v436_v10 = vsel %vm434_vm1, %v435_v34, %v433_v9  ;;  %v445_v17 = vsel %vm444_vm2, %v1011_v6, %v443_v51  ;;  %v467_v11 = vmul.f32 %v466_v4, %v1015_v7  ;;  %v490_v14 = vmul.f32 %v674_v53, %v489_v5 }
  0x5c   : > { %v448_v15 = vsel %vm446_vm3, %v447_v45, %v445_v17  ;;  %v457_v16 = vsel %vm456_vm4, %v1013_v46, %v455_v8  ;;  %v479_v21 = vmul.f32 %v478_v55, %v1017_v23  ;;  %v502_v35 = vmul.f32 %v676_v38, %v501_v13 }
  0x5d   : > { %v460_v39 = vsel %vm458_vm5, %v459_v50, %v457_v16  ;;  %v469_v34 = vsel %vm468_vm6, %v1015_v7, %v467_v11  ;;  %v491_v40 = vmul.f32 %v490_v14, %v1020_v26  ;;  %v513_v44 = vsub.f32 1.5, %v512_v54 }
  0x5e   : > { %v481_v6 = vsel %vm480_vm7, %v1017_v23, %v479_v21  ;;  %v503_v45 = vmul.f32 %v502_v35, %v1023_v12  ;;  %v521_v47 = vadd.f32 %v448_v15, %v436_v10  ;;  %v472_v46 = vsel %vm470_vm8, %v471_v36, %v469_v34 }
  0x5f   : > { %v495_v48 = vand.u32 2147483648, %v1020_v26  ;;  %v514_v49 = vmul.f32 %v678_v56, %v513_v44  ;;  %v493_v50 = vsel %vm492_vm9, %v1020_v26, %v491_v40  ;;  %v484_v23 = vsel %vm482_vm10, %v483_v22, %v481_v6 }
  0x60   : > { %v522_v30 = vadd.f32 %v521_v47, %v460_v39  ;;  %v507_v53 = vand.u32 2147483648, %v1023_v12  ;;  %v505_v7 = vsel %vm504_vm11, %v1023_v12, %v503_v45  ;;  %v519_v37 = vand.u32 2147483648, %v1026_v27 }
  0x61   : > { %v515_v31 = vmul.f32 %v514_v49, %v1026_v27  ;;  %v496_v36 = vsel %vm494_vm12, %v495_v48, %v493_v50 }
  0x62   : > { %v523_v20 = vadd.f32 %v522_v30, %v472_v46  ;;  %v508_v41 = vsel %vm506_vm14, %v507_v53, %v505_v7 }
  0x63   : > { %v517_v38 = vsel %vm516_vm13, %v1026_v27, %v515_v31 }
  0x64   : > { %v524_v26 = vadd.f32 %v523_v20, %v484_v23  ;;  %v520_v22 = vsel %vm518_vm15, %v519_v37, %v517_v38 }
  0x66   : > { %v525_v42 = vadd.f32 %v524_v26, %v496_v36 }
  0x68   : > { %v526_v43 = vadd.f32 %v525_v42, %v508_v41 }
  0x6a   : > { %v527_v56 = vadd.f32 %v526_v43, %v520_v22 }
  0x6c   : > { %530 = vst [vmem:[%s173_s22] sm:$0xff] %v527_v56 }
  0x6d PF: > { %s20_s15 = sadd.s32 1, %s715_s15   ;;  %s1117_s13 = smov %s711_s14 }
  0x6e   : > { %p17_p5 = scmp.ge.s32.totalorder %s20_s15, 4   ;;  %s1118_s14 = smov %s1120_s0 }
  0x70   :  { %19 = sbr.rel (!%p17_p5) target bundleno = 8 (0x8), region = 60 }

</bundles_post_ra>
